<compile_context>
chip_gen: v5e
topology: v5e:2x2
jax: 0.10.0
libtpu: 0.0.40
codegen_flags: <defaults>
</compile_context>

<pallas_src>
from functools import partial

import jax
import jax.numpy as jnp
import numpy as np
from jax.experimental import pallas as pl
from jax.experimental.pallas import tpu as pltpu


# ----------------------------- tiling helpers -------------------------------
def _round_up(x, m):
    return ((x + m - 1) // m) * m


def _tile_budget():
    """Per-generation (max lane tile, explicit scoped-VMEM limit).

    v5e/v6e: 128 MiB physical VMEM but only 16/32 MiB scoped by default ->
    large tile + raise the limit explicitly.  v7x: 64 MiB physical -> same
    tile cap but a limit that leaves headroom."""
    try:
        vmem = pltpu.get_tpu_info().vmem_capacity_bytes
    except Exception:  # pragma: no cover - conservative fallback
        vmem = 64 << 20
    if vmem >= (100 << 20):          # v5e / v6e (128 MiB physical)
        return 16384, 64 << 20
    return 16384, 40 << 20           # v7x (64 MiB physical)


# ----------------------------- Pallas kernel --------------------------------
def _make_koopman_kernel(c_in, c_hid, c_out, pad):
    """Fused per-pixel MLP in [C, TN] layout (pixels on the lane axis)."""

    def kernel(slab_ref, x_ref, o_ref):
        x = x_ref[...]                                    # (c_in, TN) f32

        # obj_encoding: Conv2d(1x1) + ReLU, K = c_in (=4) -> unrolled VPU FMA.
        # Computed directly into the c_hid-row layout; slab rows beyond
        # obj_enc_dim are zero so those rows come out as relu(0) = 0 and all
        # following contractions are uniform (*, c_hid) x (c_hid, TN) matmuls.
        s0 = slab_ref[0]
        w0 = s0[:c_hid, :c_in]                            # (c_hid, c_in)
        h = s0[:c_hid, pad:pad + 1] + w0[:, 0:1] * x[0:1, :]
        for i in range(1, c_in):
            h = h + w0[:, i:i + 1] * x[i:i + 1, :]
        h = jnp.maximum(h, 0.0)                           # (c_hid, TN) f32

        # embedding[0:2]: Conv2d(1x1) + ReLU -> MXU, bf16 operands, f32 acc.
        s1 = slab_ref[1]
        h = jnp.dot(s1[:c_hid, :c_hid].astype(jnp.bfloat16),
                    h.astype(jnp.bfloat16),
                    preferred_element_type=jnp.float32) + s1[:c_hid, pad:pad + 1]
        h = jnp.maximum(h, 0.0)

        # embedding[2:4]: Conv2d(1x1) + ReLU -> MXU, bf16 operands, f32 acc.
        s2 = slab_ref[2]
        h = jnp.dot(s2[:c_hid, :c_hid].astype(jnp.bfloat16),
                    h.astype(jnp.bfloat16),
                    preferred_element_type=jnp.float32) + s2[:c_hid, pad:pad + 1]
        h = jnp.maximum(h, 0.0)

        # embedding[4]: Conv2d(1x1), no activation -> MXU, bf16 operands.
        s3 = slab_ref[3]
        o = jnp.dot(s3[:c_out, :c_hid].astype(jnp.bfloat16),
                    h.astype(jnp.bfloat16),
                    preferred_element_type=jnp.float32) + s3[:c_out, pad:pad + 1]
        o_ref[...] = o.astype(o_ref.dtype)                # (c_out, TN) lane-dense

    return kernel


def koopman_mlp_nchw(dyn_nchw, slab, dims, *, max_tn=None, vmem_limit=None):
    """dyn_nchw: [B, c_in, H, W] f32 -> [B, g_dim, H, W] f32, one fused kernel."""
    c_in, _, c_hid, c_out = dims
    b, _, hgt, wid = dyn_nchw.shape
    n = hgt * wid
    pad_lane = slab.shape[-1] - 1

    tn_cap, vlim = _tile_budget()
    if max_tn is None:
        max_tn = tn_cap
    if vmem_limit is None:
        vmem_limit = vlim

    # NCHW kept as-is: pixel axis H*W is already the minor (lane) axis.
    x = dyn_nchw.reshape(b, c_in, n)
    n128 = _round_up(n, 128)
    tn = min(max_tn, n128)                    # multiple of 128
    n_pad = _round_up(n, tn)
    if n_pad != n:
        # Only hit when H*W is not a multiple of the (128-aligned) tile;
        # padded lanes produce junk that is sliced off below.
        x = jnp.pad(x, ((0, 0), (0, 0), (0, n_pad - n)))

    grid = (b, n_pad // tn)
    kernel = _make_koopman_kernel(c_in, c_hid, c_out, pad_lane)

    out = pl.pallas_call(
        kernel,
        out_shape=jax.ShapeDtypeStruct((b, c_out, n_pad), jnp.float32),
        grid=grid,
        in_specs=[
            # one small packed parameter slab, resident in VMEM every step
            pl.BlockSpec(slab.shape, lambda bi, ti: (0, 0, 0)),
            # per-image pixel tiles along the lane axis (lane-dense)
            pl.BlockSpec((None, c_in, tn), lambda bi, ti: (bi, 0, ti)),
        ],
        out_specs=pl.BlockSpec((None, c_out, tn), lambda bi, ti: (bi, 0, ti)),
        compiler_params=pltpu.CompilerParams(
            dimension_semantics=("parallel", "parallel"),
            vmem_limit_bytes=vmem_limit),
    )(slab, x)

    if n_pad != n:
        out = out[:, :, :n]
    return out.reshape(b, c_out, hgt, wid)


# ------------------------------ parameters ----------------------------------
def init_params(key, input_dim, obj_enc_dim, hidden_dim, g_dim):
    """Deterministic synthetic weights in PyTorch Conv2d(1x1) convention:
    weight (c_out, c_in), bias (c_out,)."""
    ks = jax.random.split(key, 8)

    def lin(kw, kb, cin, cout):
        bound = 1.0 / np.sqrt(cin)
        w = jax.random.uniform(kw, (cout, cin), jnp.float32, -bound, bound)
        b = jax.random.uniform(kb, (cout,), jnp.float32, -bound, bound)
        return w, b

    return [
        lin(ks[0], ks[1], input_dim, obj_enc_dim),
        lin(ks[2], ks[3], obj_enc_dim, hidden_dim),
        lin(ks[4], ks[5], hidden_dim, hidden_dim),
        lin(ks[6], ks[7], hidden_dim, g_dim),
    ]


def pack_params(layers):
    """Pack the 4 (weight, bias) pairs into one zero-padded slab of shape
    (4, P, P+1): lanes [:P] hold the weight, lane P holds the bias column.
    Zero padding is what lets the kernel use uniform c_hid-wide contractions."""
    p = max(max(w.shape) for w, _ in layers)
    slab = np.zeros((len(layers), p, p + 1), np.float32)
    for l, (w, b) in enumerate(layers):
        co, ci = w.shape
        slab[l, :co, :ci] = np.asarray(w)
        slab[l, :co, p] = np.asarray(b)
    return jnp.asarray(slab)


# ------------------------------ module glue ---------------------------------
def unroll_feat_map_and_flatten(x, n_timesteps):
    # [bs*T, C, H, W] -> [bs, T, C, H, W] -> flatten(0, 1) == identity.
    bs_t, c, h, w = x.shape
    assert bs_t % n_timesteps == 0
    return x.reshape(bs_t // n_timesteps, n_timesteps, c, h, w).reshape(bs_t, c, h, w)


@partial(jax.jit, static_argnames=("s_sta_dim", "dims", "n_timesteps"))
def koopman_mapping_forward(states, slab, *, s_sta_dim, dims, n_timesteps):
    """states: [B, s_sta_dim + input_dim, H, W] (NCHW).  Returns the same dict
    as the PyTorch module: sta_obs, dyn_obs, comp_obs (all NCHW)."""
    c_in = dims[0]
    dyn_states = states[:, s_sta_dim:s_sta_dim + c_in]     # [B, c_in, H, W]
    sta_states = states[:, :s_sta_dim]                      # [B, s_sta, H, W]

    obs = koopman_mlp_nchw(dyn_states, slab, dims)          # [B, g_dim, H, W]

    sta_states = unroll_feat_map_and_flatten(sta_states, n_timesteps)
    obs = unroll_feat_map_and_flatten(obs, n_timesteps)
    obs_stack = jnp.concatenate([sta_states, obs], axis=1)
    return {"sta_obs": sta_states, "dyn_obs": obs, "comp_obs": obs_stack}


# ------------------------------ reference ----------------------------------
def reference_forward(states, layers, *, s_sta_dim, n_timesteps):
    (w1, b1), (w2, b2), (w3, b3), (w4, b4) = layers
    dyn = states[:, s_sta_dim:]
    sta = states[:, :s_sta_dim]
    x = jnp.transpose(dyn, (0, 2, 3, 1))               # NHWC
    h = jax.nn.relu(jnp.einsum("bhwc,oc->bhwo", x, w1) + b1)
    h = jax.nn.relu(jnp.einsum("bhwc,oc->bhwo", h, w2) + b2)
    h = jax.nn.relu(jnp.einsum("bhwc,oc->bhwo", h, w3) + b3)
    o = jnp.einsum("bhwc,oc->bhwo", h, w4) + b4
    obs = jnp.transpose(o, (0, 3, 1, 2))
    sta = unroll_feat_map_and_flatten(sta, n_timesteps)
    obs = unroll_feat_map_and_flatten(obs, n_timesteps)
    return {"sta_obs": sta, "dyn_obs": obs,
            "comp_obs": jnp.concatenate([sta, obs], axis=1)}


# --------------------------------- main -------------------------------------
if __name__ == "__main__":
    # Module hyperparameters (small, consistent with the PyTorch __init__).
    input_dim = 4        # dynamic-state channels fed to obj_encoding
    s_sta_dim = 2        # static-state channels split off the front
    obj_enc_dim = 8
    hidden_dim = 32
    g_dim = 16
    n_timesteps = 1      # B = bs * n_timesteps
    B, H, W = 2, 16, 16
    dims = (input_dim, obj_enc_dim, hidden_dim, g_dim)

    key = jax.random.PRNGKey(0)
    k_params, k_x = jax.random.split(key)
    layers = init_params(k_params, input_dim, obj_enc_dim, hidden_dim, g_dim)
    slab = pack_params(layers)

    states = jax.random.normal(k_x, (B, s_sta_dim + input_dim, H, W), jnp.float32)

    out = koopman_mapping_forward(states, slab, s_sta_dim=s_sta_dim,
                                  dims=dims, n_timesteps=n_timesteps)
    jax.block_until_ready(out)

    ref = reference_forward(states, layers, s_sta_dim=s_sta_dim,
                            n_timesteps=n_timesteps)
    # Tolerance slightly relaxed vs the pure-f32 version because the two deep
    # (K=32) contractions now use bf16 MXU operands (f32 accumulation).
    for name in ("sta_obs", "dyn_obs", "comp_obs"):
        np.testing.assert_allclose(np.asarray(out[name]), np.asarray(ref[name]),
                                   rtol=2e-2, atol=2e-2)
        assert out[name].shape == ref[name].shape

    print("KERNEL_OK")
</pallas_src>

<mosaic_0001>
module attributes {stable_mosaic.version = 11 : i64} {
  func.func @kernel(%arg0: i32, %arg1: i32, %arg2: memref<4x32x33xf32, #tpu.memory_space<vmem>>, %arg3: memref<1x4x256xf32, #tpu.memory_space<vmem>>, %arg4: memref<1x16x256xf32, #tpu.memory_space<vmem>>) attributes {dimension_semantics = [#tpu.dimension_semantics<parallel>, #tpu.dimension_semantics<parallel>], iteration_bounds = array<i64: 2, 1>, scalar_prefetch = 0 : i64, scratch_operands = 0 : i64, tpu.core_type = #tpu.core_type<tc>, window_params = [{pipeline_mode = #tpu.pipeline_mode<synchronous>, transform_indices = @transform_0, window_bounds = array<i64: 4, 32, 33>}, {transform_indices = @transform_1, window_bounds = array<i64: 1, 4, 256>}, {transform_indices = @transform_2, window_bounds = array<i64: 1, 16, 256>}]} {
    %c0 = arith.constant 0 : index
    %c0_0 = arith.constant 0 : index
    %c0_1 = arith.constant 0 : index
    %0 = vector.load %arg3[%c0, %c0_0, %c0_1] : memref<1x4x256xf32, #tpu.memory_space<vmem>>, vector<1x4x256xf32>
    %1 = vector.shape_cast %0 : vector<1x4x256xf32> to vector<4x256xf32>
    %c0_2 = arith.constant 0 : index
    %c0_3 = arith.constant 0 : index
    %c0_4 = arith.constant 0 : index
    %2 = vector.load %arg2[%c0_2, %c0_3, %c0_4] : memref<4x32x33xf32, #tpu.memory_space<vmem>>, vector<1x32x33xf32>
    %3 = vector.shape_cast %2 : vector<1x32x33xf32> to vector<32x33xf32>
    %4 = vector.extract_strided_slice %3 {offsets = [0, 0], sizes = [32, 4], strides = [1, 1]} : vector<32x33xf32> to vector<32x4xf32>
    %5 = vector.extract_strided_slice %3 {offsets = [0, 32], sizes = [32, 1], strides = [1, 1]} : vector<32x33xf32> to vector<32x1xf32>
    %6 = vector.extract_strided_slice %4 {offsets = [0, 0], sizes = [32, 1], strides = [1, 1]} : vector<32x4xf32> to vector<32x1xf32>
    %7 = vector.extract_strided_slice %1 {offsets = [0, 0], sizes = [1, 256], strides = [1, 1]} : vector<4x256xf32> to vector<1x256xf32>
    %8 = vector.broadcast %6 : vector<32x1xf32> to vector<32x256xf32>
    %9 = vector.broadcast %7 : vector<1x256xf32> to vector<32x256xf32>
    %10 = arith.mulf %8, %9 : vector<32x256xf32>
    %11 = vector.broadcast %5 : vector<32x1xf32> to vector<32x256xf32>
    %12 = arith.addf %11, %10 : vector<32x256xf32>
    %13 = vector.extract_strided_slice %4 {offsets = [0, 1], sizes = [32, 1], strides = [1, 1]} : vector<32x4xf32> to vector<32x1xf32>
    %14 = vector.extract_strided_slice %1 {offsets = [1, 0], sizes = [1, 256], strides = [1, 1]} : vector<4x256xf32> to vector<1x256xf32>
    %15 = vector.broadcast %13 : vector<32x1xf32> to vector<32x256xf32>
    %16 = vector.broadcast %14 : vector<1x256xf32> to vector<32x256xf32>
    %17 = arith.mulf %15, %16 : vector<32x256xf32>
    %18 = arith.addf %12, %17 : vector<32x256xf32>
    %19 = vector.extract_strided_slice %4 {offsets = [0, 2], sizes = [32, 1], strides = [1, 1]} : vector<32x4xf32> to vector<32x1xf32>
    %20 = vector.extract_strided_slice %1 {offsets = [2, 0], sizes = [1, 256], strides = [1, 1]} : vector<4x256xf32> to vector<1x256xf32>
    %21 = vector.broadcast %19 : vector<32x1xf32> to vector<32x256xf32>
    %22 = vector.broadcast %20 : vector<1x256xf32> to vector<32x256xf32>
    %23 = arith.mulf %21, %22 : vector<32x256xf32>
    %24 = arith.addf %18, %23 : vector<32x256xf32>
    %25 = vector.extract_strided_slice %4 {offsets = [0, 3], sizes = [32, 1], strides = [1, 1]} : vector<32x4xf32> to vector<32x1xf32>
    %26 = vector.extract_strided_slice %1 {offsets = [3, 0], sizes = [1, 256], strides = [1, 1]} : vector<4x256xf32> to vector<1x256xf32>
    %27 = vector.broadcast %25 : vector<32x1xf32> to vector<32x256xf32>
    %28 = vector.broadcast %26 : vector<1x256xf32> to vector<32x256xf32>
    %29 = arith.mulf %27, %28 : vector<32x256xf32>
    %30 = arith.addf %24, %29 : vector<32x256xf32>
    %cst = arith.constant 0.000000e+00 : f32
    %31 = vector.broadcast %cst : f32 to vector<32x256xf32>
    %32 = arith.maximumf %30, %31 : vector<32x256xf32>
    %c1 = arith.constant 1 : index
    %c0_5 = arith.constant 0 : index
    %c0_6 = arith.constant 0 : index
    %33 = vector.load %arg2[%c1, %c0_5, %c0_6] : memref<4x32x33xf32, #tpu.memory_space<vmem>>, vector<1x32x33xf32>
    %34 = vector.shape_cast %33 : vector<1x32x33xf32> to vector<32x33xf32>
    %35 = vector.extract_strided_slice %34 {offsets = [0, 0], sizes = [32, 32], strides = [1, 1]} : vector<32x33xf32> to vector<32x32xf32>
    %36 = arith.truncf %35 : vector<32x32xf32> to vector<32x32xbf16>
    %37 = arith.truncf %32 : vector<32x256xf32> to vector<32x256xbf16>
    %cst_7 = arith.constant dense<0.000000e+00> : vector<32x256xf32>
    %38 = tpu.matmul %36, %37, %cst_7 {dimension_numbers = #tpu.dot_dimension_numbers<[1], [0], [0], [1], [0, 0, 1, 1], [], []>} : vector<32x32xbf16>, vector<32x256xbf16>, vector<32x256xf32> -> vector<32x256xf32>
    %39 = vector.extract_strided_slice %34 {offsets = [0, 32], sizes = [32, 1], strides = [1, 1]} : vector<32x33xf32> to vector<32x1xf32>
    %40 = vector.broadcast %39 : vector<32x1xf32> to vector<32x256xf32>
    %41 = arith.addf %38, %40 : vector<32x256xf32>
    %cst_8 = arith.constant 0.000000e+00 : f32
    %42 = vector.broadcast %cst_8 : f32 to vector<32x256xf32>
    %43 = arith.maximumf %41, %42 : vector<32x256xf32>
    %c2 = arith.constant 2 : index
    %c0_9 = arith.constant 0 : index
    %c0_10 = arith.constant 0 : index
    %44 = vector.load %arg2[%c2, %c0_9, %c0_10] : memref<4x32x33xf32, #tpu.memory_space<vmem>>, vector<1x32x33xf32>
    %45 = vector.shape_cast %44 : vector<1x32x33xf32> to vector<32x33xf32>
    %46 = vector.extract_strided_slice %45 {offsets = [0, 0], sizes = [32, 32], strides = [1, 1]} : vector<32x33xf32> to vector<32x32xf32>
    %47 = arith.truncf %46 : vector<32x32xf32> to vector<32x32xbf16>
    %48 = arith.truncf %43 : vector<32x256xf32> to vector<32x256xbf16>
    %cst_11 = arith.constant dense<0.000000e+00> : vector<32x256xf32>
    %49 = tpu.matmul %47, %48, %cst_11 {dimension_numbers = #tpu.dot_dimension_numbers<[1], [0], [0], [1], [0, 0, 1, 1], [], []>} : vector<32x32xbf16>, vector<32x256xbf16>, vector<32x256xf32> -> vector<32x256xf32>
    %50 = vector.extract_strided_slice %45 {offsets = [0, 32], sizes = [32, 1], strides = [1, 1]} : vector<32x33xf32> to vector<32x1xf32>
    %51 = vector.broadcast %50 : vector<32x1xf32> to vector<32x256xf32>
    %52 = arith.addf %49, %51 : vector<32x256xf32>
    %cst_12 = arith.constant 0.000000e+00 : f32
    %53 = vector.broadcast %cst_12 : f32 to vector<32x256xf32>
    %54 = arith.maximumf %52, %53 : vector<32x256xf32>
    %c3 = arith.constant 3 : index
    %c0_13 = arith.constant 0 : index
    %c0_14 = arith.constant 0 : index
    %55 = vector.load %arg2[%c3, %c0_13, %c0_14] : memref<4x32x33xf32, #tpu.memory_space<vmem>>, vector<1x32x33xf32>
    %56 = vector.shape_cast %55 : vector<1x32x33xf32> to vector<32x33xf32>
    %57 = vector.extract_strided_slice %56 {offsets = [0, 0], sizes = [16, 32], strides = [1, 1]} : vector<32x33xf32> to vector<16x32xf32>
    %58 = arith.truncf %57 : vector<16x32xf32> to vector<16x32xbf16>
    %59 = arith.truncf %54 : vector<32x256xf32> to vector<32x256xbf16>
    %cst_15 = arith.constant dense<0.000000e+00> : vector<16x256xf32>
    %60 = tpu.matmul %58, %59, %cst_15 {dimension_numbers = #tpu.dot_dimension_numbers<[1], [0], [0], [1], [0, 0, 1, 1], [], []>} : vector<16x32xbf16>, vector<32x256xbf16>, vector<16x256xf32> -> vector<16x256xf32>
    %61 = vector.extract_strided_slice %56 {offsets = [0, 32], sizes = [16, 1], strides = [1, 1]} : vector<32x33xf32> to vector<16x1xf32>
    %62 = vector.broadcast %61 : vector<16x1xf32> to vector<16x256xf32>
    %63 = arith.addf %60, %62 : vector<16x256xf32>
    %c0_16 = arith.constant 0 : index
    %c0_17 = arith.constant 0 : index
    %c0_18 = arith.constant 0 : index
    %64 = vector.load %arg4[%c0_16, %c0_17, %c0_18] : memref<1x16x256xf32, #tpu.memory_space<vmem>>, vector<1x16x256xf32>
    %65 = vector.shape_cast %64 : vector<1x16x256xf32> to vector<16x256xf32>
    %66 = vector.shape_cast %63 : vector<16x256xf32> to vector<1x16x256xf32>
    tpu.vector_store %arg4[%c0_16, %c0_17, %c0_18], %66 {strides = array<i32>} : memref<1x16x256xf32, #tpu.memory_space<vmem>>, vector<1x16x256xf32>,
    return
  }
  func.func @transform_0(%arg0: i32, %arg1: i32) -> (i32, i32, i32) {
    %c0_i32 = arith.constant 0 : i32
    %c0_i32_0 = arith.constant 0 : i32
    %c0_i32_1 = arith.constant 0 : i32
    %c0_i32_2 = arith.constant 0 : i32
    return %c0_i32, %c0_i32_0, %c0_i32_1 : i32, i32, i32
  }
  func.func @transform_1(%arg0: i32, %arg1: i32) -> (i32, i32, i32) {
    %c0_i32 = arith.constant 0 : i32
    %c0_i32_0 = arith.constant 0 : i32
    return %arg0, %c0_i32, %arg1 : i32, i32, i32
  }
  func.func @transform_2(%arg0: i32, %arg1: i32) -> (i32, i32, i32) {
    %c0_i32 = arith.constant 0 : i32
    %c0_i32_0 = arith.constant 0 : i32
    return %arg0, %c0_i32, %arg1 : i32, i32, i32
  }
}

</mosaic_0001>

<bundles_post_ra>
// kernel: koopman_mapping_forward.1
= control target key start
LH: loop header
LB: loop body
LE: loop exit
PB: predicated region body
PF: predicated region fallthrough
CT: control target
= control target key end

     0   :  { %s801_s9 = smov 0   ;;  %s803_s10 = smov 0   ;;  %s970_s0 = inlined_call_operand.vmem [shape: f32[4,32,33], index: 0, kind: input, shape index: {}]   ;;  %s971_s1 = inlined_call_operand.vmem [shape: f32[2,4,256], index: 1, kind: input, shape index: {}]   ;;  %s972_s2 = inlined_call_operand.vmem [shape: f32[2,16,256], index: 2, kind: output, shape index: {}]  }
   0x1   :  { %s805_s11 = smov 0  }
   0x2 LB: > { %s24_s12 = sadd.s32 1, %s775_s10  ;;  %p681_p0 = scmp.ge.s32.totalorder %s779_s11, 1  ;;  %s779_s11 = sphi %s805_s11, %s12_s11   ;;  %s775_s10 = sphi %s803_s10, %s974_s10   ;;  %s771_s9 = sphi %s801_s9, %s973_s9  }
   0x3   : > { %p26_p1 = scmp.ge.s32.totalorder %s24_s12, 2  ;;  %p133_p2 = scmp.lt.s32.totalorder %s779_s11, 3 }
   0x5   : > { %s976_s12 = smov (%p26_p1, %s24_s12), 0  ;;  %p134_p3 = pnand %p681_p0, %p133_p2 }
   0x6   : > { %p164_p4 = scmp.lt.s32.totalorder (!%p134_p3), %s771_s9, 1 }
   0x7   : > { %137 = sbr.rel (%p134_p3) target bundleno = 665 (0x299), region = 28 }
   0xc   : > { %v187_v0 = vld [vmem:[%s970_s0 + $0x10] sm:$0xff]  ;;  %v781_v1 = vmov 32   ;;  %v782_v2 = vmov 0   ;;  %v783_v3 = vmov 1   ;;  %v188_v4 = vld [vmem:[%s970_s0 + $0x18] sm:$0xff]  ;;  %v185_v5 = vld [vmem:[%s970_s0] sm:$0xff] }
   0xd   : > { %740 = vset.pattern.permute.xlu1 %v781_v1  ;;  %739 = vset.pattern.permute.xlu0 %v782_v2  ;;  %v186_v6 = vld [vmem:[%s970_s0 + $0x8] sm:$0xff]  ;;  %v784_v7 = vmov 2   ;;  %v785_v8 = vmov 3   ;;  %s978_s9 = smov (!%p164_p4, %s771_s9), 1  ;;  %v854_v35 = vld [vmem:[%s970_s0 + $0x20] sm:$0xff]  ;;  %v866_v47 = vld [vmem:[%s970_s0 + $0x30] sm:$0xff] }
   0xe   : > { %233 = vperm.xlu1 %740, %v187_v0   ;;  %201 = vperm.xlu0 %739, %v187_v0   ;;  %s708_s21 = sshll.u32 %s978_s9, 3  ;;  %v871_v48 = vld [vmem:[%s970_s0 + $0x38] sm:$0xff]  ;;  %vm401_vm0 = vcmask 261120  }
   0xf   : > { %741 = vset.pattern.permute.xlu2 %v783_v3  ;;  %s171_s24 = scalar_lea.vmem %s971_s1, %s708_s21  ;;  %s709_s21 = sshll.u32 %s978_s9, 5 }
  0x10   : > { %257 = vperm.xlu2 %741, %v187_v0   ;;  %v184_v19 = vld [vmem:[%s171_s24] sm:$0xff]  ;;  %s181_s24 = scalar_lea.vmem %s972_s2, %s709_s21 }
  0x11   : > { %v210_v20 = vperm.slane %v184_v19, 0  ;;  %v211_v21 = vperm.slane %v184_v19, 4  ;;  %v264_v23 = vperm.slane %v184_v19, 1  ;;  %v265_v24 = vperm.slane %v184_v19, 5 }
  0x12   : > { %v302_v29 = vperm.slane %v184_v19, 2  ;;  %v303_v30 = vperm.slane %v184_v19, 6  ;;  %v340_v36 = vperm.slane %v184_v19, 3  ;;  %v341_v37 = vperm.slane %v184_v19, 7 }
  0x13   : > { %v214_v25 = vperm.slane %v210_v20, 0  ;;  %v215_v26 = vperm.slane %v211_v21, 0  ;;  %v847_v31 = vperm.slane %v264_v23, 1  ;;  %v849_v32 = vperm.slane %v265_v24, 1 }
  0x14   : > { %v857_v38 = vperm.slane %v302_v29, 2  ;;  %v859_v39 = vperm.slane %v303_v30, 2  ;;  %v875_v50 = vperm.slane %v340_v36, 3  ;;  %v877_v51 = vperm.slane %v341_v37, 3 }
  0x16   : > { %237 = vperm.xlu1 %740, %v188_v4   ;;  %206 = vperm.xlu0 %739, %v188_v4  }
  0x18   : > { %261 = vperm.xlu2 %741, %v188_v4  }
  0x1e   : > { %742 = vset.pattern.permute.xlu1 %v782_v2  ;;  %191 = vperm.xlu0 %739, %v185_v5  }
  0x1f   : > { %196 = vperm.xlu1 %742, %v186_v6  }
  0x20   : > { %743 = vset.pattern.permute.xlu2 %v784_v7 }
  0x21   : > { %295 = vperm.xlu2 %743, %v187_v0  }
  0x26   : > { %744 = vset.pattern.permute.xlu0 %v784_v7 }
  0x27   : > { %745 = vset.pattern.permute.xlu1 %v781_v1  ;;  %299 = vperm.xlu0 %744, %v188_v4  }
  0x28   : > { %225 = vperm.xlu1 %745, %v185_v5  }
  0x29   : > { %746 = vset.pattern.permute.xlu2 %v781_v1 }
  0x2a   : > { %229 = vperm.xlu2 %746, %v186_v6  }
  0x2f   : > { %749 = vset.pattern.permute.xlu0 %v785_v8 }
  0x30   : > { %747 = vset.pattern.permute.xlu1 %v783_v3  ;;  %333 = vperm.xlu0 %749, %v187_v0  }
  0x31   : > { %249 = vperm.xlu1 %747, %v185_v5  }
  0x32   : > { %748 = vset.pattern.permute.xlu2 %v783_v3 }
  0x33   : > { %253 = vperm.xlu2 %748, %v186_v6  }
  0x38   : > { %329 = vperm.xlu0 %749, %v186_v6  }
  0x39   : > { %750 = vset.pattern.permute.xlu1 %v785_v8 }
  0x3a   : > { %337 = vperm.xlu1 %750, %v188_v4  }
  0x3b   : > { %751 = vset.pattern.permute.xlu2 %v784_v7 }
  0x3c   : > { %287 = vperm.xlu2 %751, %v185_v5  }
  0x40   : > { %756 = vset.pattern.permute.xlu0 %v781_v1 }
  0x41   : > { %383 = vperm.xlu0 %756, %v854_v35  }
  0x42   : > { %752 = vset.pattern.permute.xlu1 %v784_v7 }
  0x43   : > { %291 = vperm.xlu1 %752, %v186_v6  }
  0x44   : > { %753 = vset.pattern.permute.xlu2 %v785_v8 }
  0x45   : > { %325 = vperm.xlu2 %753, %v185_v5  }
  0x4b   : > { %754 = vset.pattern.permute.xlu1 %v781_v1 }
  0x4c   : > { %393 = vperm.xlu1 %754, %v866_v47  }
  0x4d   : > { %755 = vset.pattern.permute.xlu2 %v781_v1 }
  0x4e   : > { %398 = vperm.xlu2 %755, %v871_v48  }
  0x6a   : > { %v258_v9 = vpop.permute.xlu2 %257 }
  0x6b   : > { %v274_v42 = vmul.f32 %v847_v31, %v258_v9  ;;  %v275_v43 = vmul.f32 %v849_v32, %v258_v9  ;;  %v892_v9 = vld [vmem:[%s970_s0 + $0x28] sm:$0xff] }
  0x6c   : > { %388 = vperm.xlu1 %754, %v892_v9  }
  0x72   : > { %v262_v10 = vpop.permute.xlu2 %261 }
  0x73   : > { %v276_v59 = vmul.f32 %v847_v31, %v262_v10  ;;  %v277_v60 = vmul.f32 %v849_v32, %v262_v10 }
  0x7b   : > { %v296_v15 = vpop.permute.xlu2 %295 }
  0x7c   : > { %v312_v57 = vmul.f32 %v857_v38, %v296_v15  ;;  %v313_v58 = vmul.f32 %v859_v39, %v296_v15 }
  0x80   : > { %v234_v11 = vpop.permute.xlu1 %233  ;;  %v202_v12 = vpop.permute.xlu0 %201 }
  0x81   : > { %v220_v33 = vmul.f32 %v214_v25, %v202_v12  ;;  %v221_v34 = vmul.f32 %v215_v26, %v202_v12 }
  0x83   : > { %v244_v44 = vadd.f32 %v234_v11, %v220_v33  ;;  %v245_v45 = vadd.f32 %v234_v11, %v221_v34 }
  0x84   : > { %v843_v18 = vpop.permute.xlu2 %229 }
  0x85   : > { %v282_v55 = vadd.f32 %v274_v42, %v244_v44  ;;  %v283_v56 = vadd.f32 %v275_v43, %v245_v45 }
  0x87   : > { %v320_v5 = vadd.f32 %v312_v57, %v282_v55  ;;  %v321_v6 = vadd.f32 %v313_v58, %v283_v56 }
  0x88   : > { %v238_v13 = vpop.permute.xlu1 %237  ;;  %v207_v14 = vpop.permute.xlu0 %206 }
  0x89   : > { %v222_v40 = vmul.f32 %v214_v25, %v207_v14  ;;  %v223_v41 = vmul.f32 %v215_v26, %v207_v14 }
  0x8b   : > { %v246_v52 = vadd.f32 %v238_v13, %v222_v40  ;;  %v247_v53 = vadd.f32 %v238_v13, %v223_v41 }
  0x8d   : > { %v845_v28 = vpop.permute.xlu2 %253  ;;  %v284_v3 = vadd.f32 %v276_v59, %v246_v52  ;;  %v285_v4 = vadd.f32 %v277_v60, %v247_v53  ;;  %v694_v53 = vld [vmem:[%s970_s0 + $0x40] sm:$0xff] }
  0x8e   : > { %v272_v36 = vmul.f32 %v847_v31, %v845_v28  ;;  %v273_v37 = vmul.f32 %v849_v32, %v845_v28  ;;  %v697_v28 = vld [vmem:[%s970_s0 + $0x58] sm:$0xff] }
  0x8f   : > { %482 = vperm.xlu1 %754, %v697_v28  }
  0x90   : > { %v192_v17 = vpop.permute.xlu0 %191 }
  0x91   : > { %v841_v16 = vpop.permute.xlu1 %196  ;;  %v216_v1 = vmul.f32 %v214_v25, %v192_v17  ;;  %v217_v2 = vmul.f32 %v215_v26, %v192_v17 }
  0x92   : > { %v218_v21 = vmul.f32 %v214_v25, %v841_v16  ;;  %v219_v23 = vmul.f32 %v215_v26, %v841_v16 }
  0x94   : > { %v242_v16 = vadd.f32 %v843_v18, %v218_v21  ;;  %v243_v26 = vadd.f32 %v843_v18, %v219_v23  ;;  %v695_v18 = vld [vmem:[%s970_s0 + $0x48] sm:$0xff] }
  0x95   : > { %472 = vperm.xlu0 %756, %v695_v18   ;;  %v929_v58 = vpack.c.bf16 %v695_v18, %v694_v53 }
  0x96   : > { %v288_v49 = vpop.permute.xlu2 %287  ;;  %v280_v60 = vadd.f32 %v272_v36, %v242_v16 }
  0x97   : > { %v308_v24 = vmul.f32 %v857_v38, %v288_v49 }
  0x99   : > { %v300_v27 = vpop.permute.xlu0 %299 }
  0x9a   : > { %v226_v22 = vpop.permute.xlu1 %225  ;;  %v314_v61 = vmul.f32 %v857_v38, %v300_v27  ;;  %v315_v62 = vmul.f32 %v859_v39, %v300_v27  ;;  %v309_v27 = vmul.f32 %v859_v39, %v288_v49 }
  0x9b   : > { %v240_v12 = vadd.f32 %v226_v22, %v216_v1  ;;  %v241_v13 = vadd.f32 %v226_v22, %v217_v2 }
  0x9c   : > { %v322_v10 = vadd.f32 %v314_v61, %v284_v3  ;;  %v323_v11 = vadd.f32 %v315_v62, %v285_v4  ;;  %v281_v61 = vadd.f32 %v273_v37, %v243_v26 }
  0x9f   : > { %v326_v22 = vpop.permute.xlu2 %325 }
  0xa0   : > { %v346_v43 = vmul.f32 %v875_v50, %v326_v22  ;;  %v347_v44 = vmul.f32 %v877_v51, %v326_v22 }
  0xa2   : > { %v334_v54 = vpop.permute.xlu0 %333 }
  0xa3   : > { %v250_v46 = vpop.permute.xlu1 %249  ;;  %v350_v63 = vmul.f32 %v875_v50, %v334_v54  ;;  %v351_v0 = vmul.f32 %v877_v51, %v334_v54  ;;  %v703_v54 = vld [vmem:[%s970_s0 + $0x68] sm:$0xff] }
  0xa4   : > { %v270_v7 = vmul.f32 %v847_v31, %v250_v46  ;;  %v271_v8 = vmul.f32 %v849_v32, %v250_v46  ;;  %v702_v31 = vld [vmem:[%s970_s0 + $0x60] sm:$0xff]  ;;  %v696_v32 = vld [vmem:[%s970_s0 + $0x50] sm:$0xff] }
  0xa5   : > { %v358_v19 = vadd.f32 %v350_v63, %v320_v5  ;;  %v359_v20 = vadd.f32 %v351_v0, %v321_v6  ;;  %v927_v57 = vpack.c.bf16 %v697_v28, %v696_v32  ;;  %v931_v59 = vpack.c.bf16 %v703_v54, %v702_v31  ;;  %477 = vperm.xlu2 %755, %v696_v32  }
  0xa6   : > { %v278_v29 = vadd.f32 %v270_v7, %v240_v12  ;;  %v279_v30 = vadd.f32 %v271_v8, %v241_v13  ;;  %547 = vperm.xlu1 %754, %v702_v31  }
  0xa7   : > { %v366_v40 = vmax.f32 %v358_v19, 0.0  ;;  %v367_v25 = vmax.f32 %v359_v20, 0.0 }
  0xa8   : > { %v316_v45 = vadd.f32 %v308_v24, %v278_v29  ;;  %v317_v46 = vadd.f32 %v309_v27, %v279_v30  ;;  %v399_v20 = vpop.permute.xlu2 %398 }
  0xaa   : > { %v330_v55 = vpop.permute.xlu0 %329  ;;  %v354_v0 = vadd.f32 %v346_v43, %v316_v45  ;;  %v355_v1 = vadd.f32 %v347_v44, %v317_v46 }
  0xab   : > { %v348_v2 = vmul.f32 %v875_v50, %v330_v55  ;;  %v349_v3 = vmul.f32 %v877_v51, %v330_v55 }
  0xac   : > { %v338_v14 = vpop.permute.xlu1 %337  ;;  %v362_v8 = vmax.f32 %v354_v0, 0.0 }
  0xad   : > { %v352_v15 = vmul.f32 %v875_v50, %v338_v14  ;;  %v353_v17 = vmul.f32 %v877_v51, %v338_v14  ;;  %467 = vperm.xlu2 %755, %v694_v53   ;;  %v376_v50 = vpack.c.bf16 %v871_v48, %v866_v47 }
  0xaf   : > { %v360_v33 = vadd.f32 %v352_v15, %v322_v10  ;;  %v361_v34 = vadd.f32 %v353_v17, %v323_v11  ;;  %v363_v11 = vmax.f32 %v355_v1, 0.0 }
  0xb1   : > { %v368_v41 = vmax.f32 %v360_v33, 0.0  ;;  %v369_v42 = vmax.f32 %v361_v34, 0.0 }
  0xb3   : > { %v379_v49 = vpack.c.bf16 %v368_v41, %v366_v40  ;;  %v380_v52 = vpack.c.bf16 %v369_v42, %v367_v25  ;;  %v384_v21 = vpop.permute.xlu0 %383 }
  0xb5   : > { %v292_v56 = vpop.permute.xlu1 %291  ;;  %414 = vmatpush.bf16.msra.mxu0 %v379_v49  ;;  %433 = vmatpush.bf16.msra.mxu1 %v380_v52 }
  0xb6   : > { %v310_v62 = vmul.f32 %v857_v38, %v292_v56  ;;  %v311_v63 = vmul.f32 %v859_v39, %v292_v56  ;;  %v375_v39 = vpack.c.bf16 %v892_v9, %v854_v35  ;;  %552 = vperm.xlu2 %755, %v703_v54  }
  0xb8   : > { %v318_v4 = vadd.f32 %v310_v62, %v280_v60  ;;  %v319_v5 = vadd.f32 %v311_v63, %v281_v61 }
  0xba   : > { %v356_v6 = vadd.f32 %v348_v2, %v318_v4  ;;  %v357_v7 = vadd.f32 %v349_v3, %v319_v5 }
  0xbc   : > { %v364_v10 = vmax.f32 %v356_v6, 0.0  ;;  %v365_v12 = vmax.f32 %v357_v7, 0.0 }
  0xbe   : > { %v377_v13 = vpack.c.bf16 %v364_v10, %v362_v8  ;;  %v378_v38 = vpack.c.bf16 %v365_v12, %v363_v11  ;;  %v394_v35 = vpop.permute.xlu1 %393 }
  0xc0   : > { %415 = vmatpush.bf16.msra.mxu0 %v377_v13  ;;  %434 = vmatpush.bf16.msra.mxu1 %v378_v38 }
  0xc3   : > { %690 = vmatmul.msk.bf16.vlgmr.msra.gmra.mxu0 %vm401_vm0, %v375_v39  ;;  %692 = vmatmul.msk.bf16.vlgmr.msra.gmra.mxu1 %vm401_vm0, %v375_v39 }
  0xd3   : > { %691 = vmatmul.msk.bf16.gmra.mxu0 %vm401_vm0, %v376_v50  ;;  %693 = vmatmul.msk.bf16.gmra.mxu1 %vm401_vm0, %v376_v50 }
  0xde   : > { %v389_v23 = vpop.permute.xlu1 %388 }
  0xff   : > { %v478_v32 = vpop.permute.xlu2 %477 }
 0x101   : > { %v483_v55 = vpop.permute.xlu1 %482 }
 0x107   : > { %v473_v56 = vpop.permute.xlu0 %472 }
 0x140   : > { %v417_v51 = vpop.f32.mrf.mxu0  ;;  %v436_v14 = vpop.f32.mrf.mxu1 }
 0x141   : > { %v418_v34 = vadd.f32 %v417_v51, %v384_v21  ;;  %v437_v36 = vadd.f32 %v436_v14, %v384_v21  ;;  %v548_v14 = vpop.permute.xlu1 %547 }
 0x143   : > { %v446_v44 = vmax.f32 %v418_v34, 0.0  ;;  %v447_v45 = vmax.f32 %v437_v36, 0.0 }
 0x148   : > { %v419_v15 = vpop.f32.mrf.mxu0  ;;  %v438_v17 = vpop.f32.mrf.mxu1 }
 0x149   : > { %v420_v22 = vadd.f32 %v419_v15, %v389_v23  ;;  %v439_v47 = vadd.f32 %v438_v17, %v389_v23 }
 0x14b   : > { %v448_v42 = vmax.f32 %v420_v22, 0.0  ;;  %v449_v16 = vmax.f32 %v439_v47, 0.0 }
 0x14d   : > { %v461_v46 = vpack.c.bf16 %v448_v42, %v446_v44  ;;  %v462_v49 = vpack.c.bf16 %v449_v16, %v447_v45 }
 0x150   : > { %v422_v9 = vpop.f32.mrf.mxu0  ;;  %v441_v19 = vpop.f32.mrf.mxu1 }
 0x151   : > { %v423_v24 = vadd.f32 %v422_v9, %v394_v35  ;;  %v442_v27 = vadd.f32 %v441_v19, %v394_v35 }
 0x153   : > { %v450_v37 = vmax.f32 %v423_v24, 0.0  ;;  %v451_v40 = vmax.f32 %v442_v27, 0.0 }
 0x158   : > { %v424_v29 = vpop.f32.mrf.mxu0  ;;  %v443_v30 = vpop.f32.mrf.mxu1 }
 0x159   : > { %v425_v48 = vadd.f32 %v424_v29, %v399_v20  ;;  %v444_v33 = vadd.f32 %v443_v30, %v399_v20 }
 0x15b   : > { %v452_v41 = vmax.f32 %v425_v48, 0.0  ;;  %v453_v25 = vmax.f32 %v444_v33, 0.0 }
 0x15d   : > { %v463_v26 = vpack.c.bf16 %v452_v41, %v450_v37  ;;  %v464_v43 = vpack.c.bf16 %v453_v25, %v451_v40 }
 0x15f   : > { %497 = vmatpush.bf16.msra.mxu2 %v463_v26  ;;  %516 = vmatpush.bf16.msra.mxu3 %v464_v43 }
 0x163   : > { %498 = vmatpush.bf16.msra.mxu2 %v461_v46  ;;  %517 = vmatpush.bf16.msra.mxu3 %v462_v49 }
 0x166   : > { %698 = vmatmul.msk.bf16.vlgmr.msra.gmra.mxu2 %vm401_vm0, %v929_v58  ;;  %700 = vmatmul.msk.bf16.vlgmr.msra.gmra.mxu3 %vm401_vm0, %v929_v58  ;;  %v468_v58 = vpop.permute.xlu2 %467 }
 0x16e   : > { %v553_v19 = vpop.permute.xlu2 %552 }
 0x176   : > { %699 = vmatmul.msk.bf16.gmra.mxu2 %vm401_vm0, %v927_v57  ;;  %701 = vmatmul.msk.bf16.gmra.mxu3 %vm401_vm0, %v927_v57 }
 0x1e9   : > { %v500_v52 = vpop.f32.mrf.mxu2  ;;  %v519_v28 = vpop.f32.mrf.mxu3 }
 0x1ea   : > { %v501_v4 = vadd.f32 %v500_v52, %v468_v58  ;;  %v520_v57 = vadd.f32 %v519_v28, %v468_v58 }
 0x1ec   : > { %v529_v38 = vmax.f32 %v501_v4, 0.0  ;;  %v530_v39 = vmax.f32 %v520_v57, 0.0 }
 0x1f1   : > { %v502_v31 = vpop.f32.mrf.mxu2  ;;  %v521_v18 = vpop.f32.mrf.mxu3 }
 0x1f2   : > { %v503_v0 = vadd.f32 %v502_v31, %v473_v56  ;;  %v522_v1 = vadd.f32 %v521_v18, %v473_v56 }
 0x1f4   : > { %v531_v10 = vmax.f32 %v503_v0, 0.0  ;;  %v532_v11 = vmax.f32 %v522_v1, 0.0 }
 0x1f6   : > { %v541_v50 = vpack.c.bf16 %v531_v10, %v529_v38  ;;  %v542_v51 = vpack.c.bf16 %v532_v11, %v530_v39 }
 0x1f9   : > { %v505_v53 = vpop.f32.mrf.mxu2  ;;  %v524_v54 = vpop.f32.mrf.mxu3 }
 0x1fa   : > { %v506_v60 = vadd.f32 %v505_v53, %v478_v32  ;;  %v525_v61 = vadd.f32 %v524_v54, %v478_v32 }
 0x1fc   : > { %v533_v5 = vmax.f32 %v506_v60, 0.0  ;;  %v534_v6 = vmax.f32 %v525_v61, 0.0 }
 0x201   : > { %v507_v62 = vpop.f32.mrf.mxu2  ;;  %v526_v63 = vpop.f32.mrf.mxu3 }
 0x202   : > { %v508_v2 = vadd.f32 %v507_v62, %v483_v55  ;;  %v527_v3 = vadd.f32 %v526_v63, %v483_v55 }
 0x204   : > { %v535_v7 = vmax.f32 %v508_v2, 0.0  ;;  %v536_v8 = vmax.f32 %v527_v3, 0.0 }
 0x206   : > { %v543_v12 = vpack.c.bf16 %v535_v7, %v533_v5  ;;  %v544_v13 = vpack.c.bf16 %v536_v8, %v534_v6 }
 0x208   : > { %564 = vmatpush.bf16.msrb.mxu0 %v543_v12  ;;  %578 = vmatpush.bf16.msrb.mxu1 %v544_v13 }
 0x20c   : > { %565 = vmatpush.bf16.msrb.mxu0 %v541_v50  ;;  %579 = vmatpush.bf16.msrb.mxu1 %v542_v51 }
 0x20f   : > { %704 = vmatmul.msk.bf16.vlgmr.msrb.gmra.mxu0 %vm401_vm0, %v931_v59  ;;  %705 = vmatmul.msk.bf16.vlgmr.msrb.gmra.mxu1 %vm401_vm0, %v931_v59 }
 0x28c   : > { %v567_v15 = vpop.f32.mrf.mxu0  ;;  %v581_v17 = vpop.f32.mrf.mxu1 }
 0x28d   : > { %v568_v35 = vadd.f32 %v567_v15, %v548_v14  ;;  %v582_v9 = vadd.f32 %v581_v17, %v548_v14 }
 0x28f   : > { %586 = vst [vmem:[%s181_s24] sm:$0xff] %v568_v35 }
 0x290   : > { %587 = vst [vmem:[%s181_s24 + $0x8] sm:$0xff] %v582_v9 }
 0x294   : > { %v569_v20 = vpop.f32.mrf.mxu0  ;;  %v583_v21 = vpop.f32.mrf.mxu1 }
 0x295   : > { %v570_v23 = vadd.f32 %v569_v20, %v553_v19  ;;  %v584_v24 = vadd.f32 %v583_v21, %v553_v19 }
 0x297   : > { %588 = vst [vmem:[%s181_s24 + $0x10] sm:$0xff] %v570_v23 }
 0x298   : > { %589 = vst [vmem:[%s181_s24 + $0x18] sm:$0xff] %v584_v24 }
 0x299 PF: > { %s12_s11 = sadd.s32 1, %s779_s11   ;;  %s973_s9 = smov %s775_s10 }
 0x29a   : > { %p9_p5 = scmp.ge.s32.totalorder %s12_s11, 4   ;;  %s974_s10 = smov %s976_s12 }
 0x29c   :  { %11 = sbr.rel (!%p9_p5) target bundleno = 2 (0x2), region = 61 }

</bundles_post_ra>
